<compile_context>
chip_gen: v5e
topology: v5e:2x2
jax: 0.10.0
libtpu: 0.0.40
codegen_flags: <defaults>
</compile_context>

<pallas_src>
import jax
import jax.numpy as jnp
from jax.experimental import pallas as pl
from jax.experimental.pallas import tpu as pltpu

N_NODES = 16          # number of graph nodes
INPUT_DIM = 1         # matches GCNConv(1, 256)
HID1 = 256
HID2 = 64
EMBED_DIM = 64        # embed_dim must equal 64 for conv3 input to line up
PAD_DIM = 128         # 64-wide channels padded to a full lane width
BN_EPS = 1e-5


def gnn_block_kernel(a_ref, xr_ref, vslab_ref, wslab_ref, o_ref):
    """3 GCN layers + (folded) batch norms + ReLUs, fully VMEM resident."""
    a = a_ref[...]                                    # [N, N] normalized adjacency
    x_row = xr_ref[...]                               # [1, N]  (x transposed)

    # ----- layer 0: GCNConv(1 -> 256) + BN1 + ReLU (BN folded into w1f/b1f).
    # A @ (x @ W1') == (A @ x) * w1'  because W1' is a single row; A @ x is a
    # VPU multiply + XLU lane-reduce, the rest is a broadcast FMA -> no MXU.
    t = jnp.sum(a * x_row, axis=1, keepdims=True)     # [N, 1]
    w1f = vslab_ref[0:1, :]                           # [1, 256] (BN1-folded)
    b1f = vslab_ref[1:2, :]                           # [1, 256]
    h = jnp.maximum(t * w1f + b1f, 0.0)               # [N, 256]

    # ----- layer 1: GCNConv(256 -> 64) + BN2 + ReLU (weights padded to 128 lanes).
    # Feature contraction first so the aggregation matmul only sees [N,128].
    w2p = wslab_ref[0:HID1, :]                        # [256, 128] (BN2-folded)
    b2p = vslab_ref[2:3, 0:PAD_DIM]                   # [1, 128]
    z = jnp.dot(h, w2p, preferred_element_type=jnp.float32)       # [N, 128]
    h = jnp.dot(a, z, preferred_element_type=jnp.float32) + b2p   # [N, 128]
    h = jnp.maximum(h, 0.0)                           # padded cols (>=64) stay 0

    # ----- layer 2: relu(GCNConv(64 -> 64)) (padded to 128 lanes)
    w3p = wslab_ref[HID1:HID1 + PAD_DIM, :]           # [128, 128]
    b3p = vslab_ref[2:3, PAD_DIM:2 * PAD_DIM]         # [1, 128]
    z = jnp.dot(h, w3p, preferred_element_type=jnp.float32)       # [N, 128]
    h = jnp.dot(a, z, preferred_element_type=jnp.float32) + b3p   # [N, 128]
    o_ref[...] = jnp.maximum(h, 0.0)                  # lane-dense (unmasked) store
    # TODO(synk): F.dropout is training-mode stochastic; in eval it is identity, so omitted.


def gnn_block_forward(a_norm, x, vslab, wslab):
    n = x.shape[0]
    x_row = x.reshape(1, n).astype(jnp.float32)       # [N,1] -> [1,N] (cheap XLA op)
    vmem = pl.BlockSpec(memory_space=pltpu.MemorySpace.VMEM)
    out_pad = pl.pallas_call(
        gnn_block_kernel,
        out_shape=jax.ShapeDtypeStruct((n, PAD_DIM), jnp.float32),
        in_specs=[vmem, vmem, vmem, vmem],
        out_specs=vmem,
    )(a_norm, x_row, vslab, wslab)
    return out_pad[:, :EMBED_DIM]


# ------------------------- plain-JAX glue / setup -------------------------

def build_normalized_adjacency(edge_index, n):
    """Dense PyG-style GCN normalization: D^-1/2 (A + I) D^-1/2."""
    src, dst = edge_index[0], edge_index[1]
    # scatter-ADD so duplicate edges match PyG's message summation
    a = jnp.zeros((n, n), jnp.float32).at[dst, src].add(1.0)
    a = a + jnp.eye(n, dtype=jnp.float32)             # add self loops
    deg = jnp.sum(a, axis=1)
    dinv = jax.lax.rsqrt(jnp.maximum(deg, 1e-12))
    return dinv[:, None] * a * dinv[None, :]


def init_params(key):
    ks = jax.random.split(key, 9)

    def lin_w(k, fan_in, fan_out):
        # deterministic synthetic init (weight stored as [in, out] == W^T)
        return (jax.random.normal(k, (fan_in, fan_out), jnp.float32)
                / jnp.sqrt(jnp.float32(fan_in)))

    def bn_pack(kg, kb, c):
        gamma = 1.0 + 0.1 * jax.random.normal(kg, (1, c), jnp.float32)
        beta = 0.1 * jax.random.normal(kb, (1, c), jnp.float32)
        mean = 0.05 * jax.random.normal(jax.random.fold_in(kg, 7), (1, c), jnp.float32)
        var = jnp.abs(1.0 + 0.1 * jax.random.normal(jax.random.fold_in(kb, 11),
                                                    (1, c), jnp.float32))
        return jnp.concatenate([gamma, beta, mean, var], axis=0)   # [4, C]

    return {
        "w1": lin_w(ks[0], INPUT_DIM, HID1),
        "b1": 0.1 * jax.random.normal(ks[1], (1, HID1), jnp.float32),
        "bn1": bn_pack(ks[2], ks[3], HID1),
        "w2": lin_w(ks[4], HID1, HID2),
        "b2": 0.1 * jax.random.normal(ks[5], (1, HID2), jnp.float32),
        "bn2": bn_pack(ks[6], ks[7], HID2),
        "w3": lin_w(ks[8], HID2, EMBED_DIM),
        "b3": 0.1 * jax.random.normal(jax.random.fold_in(ks[8], 3),
                                      (1, EMBED_DIM), jnp.float32),
    }


def fold_and_pack_params(p):
    """Fold inference-mode BN into conv weights/biases and pack into 2 slabs.

    Done ONCE on static parameters, not per forward call.
    """
    def bn_scale_shift(packed):
        g, b, m, v = packed[0:1], packed[1:2], packed[2:3], packed[3:4]
        s = g * jax.lax.rsqrt(v + BN_EPS)
        return s, b - m * s

    s1, t1 = bn_scale_shift(p["bn1"])
    w1f = p["w1"] * s1                                 # [1, 256]
    b1f = p["b1"] * s1 + t1                            # [1, 256]

    s2, t2 = bn_scale_shift(p["bn2"])
    w2f = p["w2"] * s2                                 # [256, 64]
    b2f = p["b2"] * s2 + t2                            # [1, 64]

    # vector slab: [w1f ; b1f ; (b2f_pad | b3_pad)] zero-padded to [8, 256]
    b2p = jnp.zeros((1, PAD_DIM), jnp.float32).at[:, :HID2].set(b2f)
    b3p = jnp.zeros((1, PAD_DIM), jnp.float32).at[:, :EMBED_DIM].set(p["b3"])
    row2 = jnp.concatenate([b2p, b3p], axis=1)         # [1, 256]
    vslab = jnp.concatenate(
        [w1f, b1f, row2, jnp.zeros((5, 2 * PAD_DIM), jnp.float32)], axis=0)  # [8, 256]

    # weight slab: w2f padded to [256,128] stacked on w3 padded to [128,128]
    w2p = jnp.zeros((HID1, PAD_DIM), jnp.float32).at[:, :HID2].set(w2f)
    w3p = jnp.zeros((PAD_DIM, PAD_DIM), jnp.float32).at[:HID2, :EMBED_DIM].set(p["w3"])
    wslab = jnp.concatenate([w2p, w3p], axis=0)                              # [384, 128]
    return vslab, wslab


def reference_forward(a, x, p):
    """Pure-JAX reference of the ORIGINAL (un-folded) math, for correctness."""
    def bn(h, packed):
        g, b, m, v = packed[0:1], packed[1:2], packed[2:3], packed[3:4]
        return g * (h - m) * jax.lax.rsqrt(v + BN_EPS) + b
    h = a @ (x @ p["w1"]) + p["b1"]
    h = jnp.maximum(bn(h, p["bn1"]), 0.0)
    h = a @ (h @ p["w2"]) + p["b2"]
    h = jnp.maximum(bn(h, p["bn2"]), 0.0)
    h = a @ (h @ p["w3"]) + p["b3"]
    return jnp.maximum(h, 0.0)


if __name__ == "__main__":
    key = jax.random.PRNGKey(0)
    k_x, k_p = jax.random.split(key)

    # node features: [N, 1]  (GCNConv(1, 256) implies scalar node features)
    x = jax.random.normal(k_x, (N_NODES, INPUT_DIM), jnp.float32)

    # undirected ring graph: edge_index [2, 2N]
    idx = jnp.arange(N_NODES, dtype=jnp.int32)
    nxt = jnp.roll(idx, -1)
    edge_index = jnp.stack([jnp.concatenate([idx, nxt]),
                            jnp.concatenate([nxt, idx])], axis=0)

    a_norm = build_normalized_adjacency(edge_index, N_NODES)
    params = init_params(k_p)
    vslab, wslab = fold_and_pack_params(params)        # one-time param prep

    out = gnn_block_forward(a_norm, x, vslab, wslab)
    out = jax.block_until_ready(out)

    ref = reference_forward(a_norm, x, params)
    assert out.shape == (N_NODES, EMBED_DIM)
    assert jnp.allclose(out, ref, atol=1e-4, rtol=1e-4), "mismatch vs JAX reference"

    print("KERNEL_OK")
</pallas_src>

<mosaic_0001>
module attributes {stable_mosaic.version = 11 : i64} {
  func.func @gnn_block_kernel(%arg0: memref<16x16xf32, #tpu.memory_space<vmem>>, %arg1: memref<1x16xf32, #tpu.memory_space<vmem>>, %arg2: memref<8x256xf32, #tpu.memory_space<vmem>>, %arg3: memref<384x128xf32, #tpu.memory_space<vmem>>, %arg4: memref<16x128xf32, #tpu.memory_space<vmem>>) attributes {dimension_semantics = [], scalar_prefetch = 0 : i64, scratch_operands = 0 : i64, tpu.core_type = #tpu.core_type<tc>} {
    %c0 = arith.constant 0 : index
    %c0_0 = arith.constant 0 : index
    %0 = vector.load %arg0[%c0, %c0_0] : memref<16x16xf32, #tpu.memory_space<vmem>>, vector<16x16xf32>
    %c0_1 = arith.constant 0 : index
    %c0_2 = arith.constant 0 : index
    %1 = vector.load %arg1[%c0_1, %c0_2] : memref<1x16xf32, #tpu.memory_space<vmem>>, vector<1x16xf32>
    %2 = vector.broadcast %1 : vector<1x16xf32> to vector<16x16xf32>
    %3 = arith.mulf %0, %2 : vector<16x16xf32>
    %cst = arith.constant dense<0.000000e+00> : vector<16xf32>
    %4 = vector.multi_reduction <add>, %3, %cst [1] : vector<16x16xf32> to vector<16xf32>
    %5 = vector.shape_cast %4 : vector<16xf32> to vector<16x1xf32>
    %c0_3 = arith.constant 0 : index
    %c0_4 = arith.constant 0 : index
    %6 = vector.load %arg2[%c0_3, %c0_4] : memref<8x256xf32, #tpu.memory_space<vmem>>, vector<1x256xf32>
    %c1 = arith.constant 1 : index
    %c0_5 = arith.constant 0 : index
    %7 = vector.load %arg2[%c1, %c0_5] : memref<8x256xf32, #tpu.memory_space<vmem>>, vector<1x256xf32>
    %8 = vector.broadcast %5 : vector<16x1xf32> to vector<16x256xf32>
    %9 = vector.broadcast %6 : vector<1x256xf32> to vector<16x256xf32>
    %10 = arith.mulf %8, %9 : vector<16x256xf32>
    %11 = vector.broadcast %7 : vector<1x256xf32> to vector<16x256xf32>
    %12 = arith.addf %10, %11 : vector<16x256xf32>
    %cst_6 = arith.constant 0.000000e+00 : f32
    %13 = vector.broadcast %cst_6 : f32 to vector<16x256xf32>
    %14 = arith.maximumf %12, %13 : vector<16x256xf32>
    %c0_7 = arith.constant 0 : index
    %c0_8 = arith.constant 0 : index
    %15 = vector.load %arg3[%c0_7, %c0_8] : memref<384x128xf32, #tpu.memory_space<vmem>>, vector<256x128xf32>
    %c2 = arith.constant 2 : index
    %c0_9 = arith.constant 0 : index
    %16 = vector.load %arg2[%c2, %c0_9] : memref<8x256xf32, #tpu.memory_space<vmem>>, vector<1x128xf32>
    %cst_10 = arith.constant dense<0.000000e+00> : vector<16x128xf32>
    %17 = tpu.matmul %14, %15, %cst_10 {dimension_numbers = #tpu.dot_dimension_numbers<[1], [0], [0], [1], [0, 0, 1, 1], [], []>} : vector<16x256xf32>, vector<256x128xf32>, vector<16x128xf32> -> vector<16x128xf32>
    %cst_11 = arith.constant dense<0.000000e+00> : vector<16x128xf32>
    %18 = tpu.matmul %0, %17, %cst_11 {dimension_numbers = #tpu.dot_dimension_numbers<[1], [0], [0], [1], [0, 0, 1, 1], [], []>} : vector<16x16xf32>, vector<16x128xf32>, vector<16x128xf32> -> vector<16x128xf32>
    %19 = vector.broadcast %16 : vector<1x128xf32> to vector<16x128xf32>
    %20 = arith.addf %18, %19 : vector<16x128xf32>
    %cst_12 = arith.constant 0.000000e+00 : f32
    %21 = vector.broadcast %cst_12 : f32 to vector<16x128xf32>
    %22 = arith.maximumf %20, %21 : vector<16x128xf32>
    %c256 = arith.constant 256 : index
    %c0_13 = arith.constant 0 : index
    %23 = vector.load %arg3[%c256, %c0_13] : memref<384x128xf32, #tpu.memory_space<vmem>>, vector<128x128xf32>
    %c2_14 = arith.constant 2 : index
    %c128 = arith.constant 128 : index
    %24 = vector.load %arg2[%c2_14, %c128] : memref<8x256xf32, #tpu.memory_space<vmem>>, vector<1x128xf32>
    %cst_15 = arith.constant dense<0.000000e+00> : vector<16x128xf32>
    %25 = tpu.matmul %22, %23, %cst_15 {dimension_numbers = #tpu.dot_dimension_numbers<[1], [0], [0], [1], [0, 0, 1, 1], [], []>} : vector<16x128xf32>, vector<128x128xf32>, vector<16x128xf32> -> vector<16x128xf32>
    %cst_16 = arith.constant dense<0.000000e+00> : vector<16x128xf32>
    %26 = tpu.matmul %0, %25, %cst_16 {dimension_numbers = #tpu.dot_dimension_numbers<[1], [0], [0], [1], [0, 0, 1, 1], [], []>} : vector<16x16xf32>, vector<16x128xf32>, vector<16x128xf32> -> vector<16x128xf32>
    %27 = vector.broadcast %24 : vector<1x128xf32> to vector<16x128xf32>
    %28 = arith.addf %26, %27 : vector<16x128xf32>
    %cst_17 = arith.constant 0.000000e+00 : f32
    %29 = vector.broadcast %cst_17 : f32 to vector<16x128xf32>
    %30 = arith.maximumf %28, %29 : vector<16x128xf32>
    %c0_18 = arith.constant 0 : index
    %c0_19 = arith.constant 0 : index
    %31 = vector.load %arg4[%c0_18, %c0_19] : memref<16x128xf32, #tpu.memory_space<vmem>>, vector<16x128xf32>
    tpu.vector_store %arg4[%c0_18, %c0_19], %30 {strides = array<i32>} : memref<16x128xf32, #tpu.memory_space<vmem>>, vector<16x128xf32>,
    return
  }
}

</mosaic_0001>

<bundles_post_ra>
// kernel: tpu_custom_call.1
= control target key start
LH: loop header
LB: loop body
LE: loop exit
PB: predicated region body
PF: predicated region fallthrough
CT: control target
= control target key end

     0   :  { %9 = vsyncpa [#allocation3], 0  ;;  %s527_s0 = inlined_call_operand.hbm [shape: f32[16,16], index: 0, kind: input, shape index: {}]   ;;  %s528_s1 = inlined_call_operand.hbm [shape: f32[1,16], index: 1, kind: input, shape index: {}]   ;;  %s529_s2 = inlined_call_operand.hbm [shape: f32[8,256], index: 2, kind: input, shape index: {}]   ;;  %s530_s3 = inlined_call_operand.hbm [shape: f32[384,128], index: 3, kind: input, shape index: {}]   ;;  %s531_s4 = inlined_call_operand.hbm [shape: f32[16,128], index: 4, kind: output, shape index: {}]  }
   0x1   :  { %10 = vsyncpa [#allocation6], 0 }
   0x2   :  { %11 = vsyncpa [#allocation9], 0  ;;  %s31_s17 = sshll.u32 %s528_s1, 4  ;;  %s32_s17 = int_to_ptr.hbm [resolvable:$true] %s31_s17 }
   0x3   :  { %12 = vsyncpa [#allocation4], 0  ;;  %s455_s18 = smov [#allocation5]   ;;  %s17_s22 = sshll.u32 %s527_s0, 4  ;;  %s18_s22 = int_to_ptr.hbm [resolvable:$true] %s17_s22 }
   0x4   :  { %s33_s19 = sshll.u32 %s455_s18, 4  ;;  %s456_s23 = smov [#allocation2]   ;;  %s34_s19 = int_to_ptr.vmem [resolvable:$true] %s33_s19 }
   0x5   :  { %36 = dma.hbm_to_vmem [thread:$0]  %s32_s17, 16, %s34_s19, [#allocation6]  }
   0x6   :  { %s19_s24 = sshll.u32 %s456_s23, 4  ;;  %s457_s25 = smov 128   ;;  %s20_s24 = int_to_ptr.vmem [resolvable:$true] %s19_s24 }
   0x7   :  { %s458_s26 = smov 8   ;;  %s42_s28 = sshll.u32 %s529_s2, 4  ;;  %s43_s28 = int_to_ptr.hbm [resolvable:$true] %s42_s28 }
   0x8   :  { %25 = dma.hbm_to_vmem [thread:$0]  %s18_s22, 256, %s20_s24, [#allocation3], %s457_s25, %s457_s25, %s458_s26  }
   0x9   :  { %s459_s29 = smov [#allocation7]   ;;  %s52_s6 = sshll.u32 %s530_s3, 4  ;;  %s53_s6 = int_to_ptr.hbm [resolvable:$true] %s52_s6 }
   0xa   :  { %s44_s30 = sshll.u32 %s459_s29, 4  ;;  %s460_s7 = smov [#allocation8]   ;;  %s45_s30 = int_to_ptr.vmem [resolvable:$true] %s44_s30 }
   0xb   :  { %47 = dma.hbm_to_vmem [thread:$0]  %s43_s28, 256, %s45_s30, [#allocation6]  }
   0xc   :  { %s54_s8 = sshll.u32 %s460_s7, 4  ;;  %s55_s8 = int_to_ptr.vmem [resolvable:$true] %s54_s8 }
   0xd   :  { %60 = dma.hbm_to_vmem [thread:$0]  %s53_s6, 6144, %s55_s8, [#allocation9], %s457_s25, %s457_s25, %s458_s26  }
   0xe   :  { %447 = dma.done.wait [#allocation3], 256  }
   0xf   :  { %448 = vsyncadd [#allocation3], 4294967040 }
  0x10   :  { %449 = dma.done.wait [#allocation6], 272  }
  0x11   :  { %450 = vsyncadd [#allocation6], 4294967024 }
  0x12   :  { %451 = dma.done.wait [#allocation9], 6144  }
  0x13   :  { %452 = vsyncadd [#allocation9], 4294961152  ;;  %v505_v0 = vld [vmem:[#allocation2] sm:$0xff]  ;;  %v326_v1 = vld [vmem:[#allocation5] ss:$0 sm:$0xff]  ;;  %vm85_vm0 = vcmask 130048  }
  0x14   :  { %v132_v2 = vld [vmem:[#allocation8 + $0x78] sm:$0xff]  ;;  %v83_v4 = vmul.f32 %v326_v1, %v505_v0  ;;  %v131_v5 = vld [vmem:[#allocation8 + $0x70] sm:$0xff]  ;;  %v508_v7 = vld [vmem:[#allocation2 + $0x8] sm:$0xff]  ;;  %s461_s2 = smov [#allocation10]   ;;  %s300_s11 = sshll.u32 %s531_s4, 4  ;;  %s301_s11 = int_to_ptr.hbm [resolvable:$true] %s300_s11 }
  0x15   :  { %v148_v3 = vld [vmem:[#allocation8 + $0xf8] sm:$0xff]  ;;  %150 = vmatpush.msra.mxu0 %v132_v2  ;;  %v147_v6 = vld [vmem:[#allocation8 + $0xf0] sm:$0xff]  ;;  %v130_v8 = vld [vmem:[#allocation8 + $0x68] sm:$0xff]  ;;  %v84_v13 = vmul.f32 %v326_v1, %v508_v7  ;;  %s298_s3 = sshll.u32 %s461_s2, 4  ;;  %s299_s3 = int_to_ptr.vmem [resolvable:$true] %s298_s3 }
  0x16   :  { %173 = vmatpush.msra.mxu1 %v148_v3  ;;  %v146_v9 = vld [vmem:[#allocation8 + $0xe8] sm:$0xff]  ;;  %v86_v10 = vsel %vm85_vm0, %v83_v4, 0.0  ;;  %v129_v11 = vld [vmem:[#allocation8 + $0x60] sm:$0xff]  ;;  %v128_v14 = vld [vmem:[#allocation8 + $0x58] sm:$0xff] }
  0x17   :  { %151 = vmatpush.msra.mxu0 %v131_v5  ;;  %87 = vadd.xlane.f32.xlu0 %v86_v10  ;;  %v145_v12 = vld [vmem:[#allocation8 + $0xe0] sm:$0xff]  ;;  %v144_v15 = vld [vmem:[#allocation8 + $0xd8] sm:$0xff]  ;;  %v127_v16 = vld [vmem:[#allocation8 + $0x50] sm:$0xff]  ;;  %v89_v18 = vsel %vm85_vm0, %v84_v13, 0.0 }
  0x18   :  { %174 = vmatpush.msra.mxu1 %v147_v6  ;;  %v143_v17 = vld [vmem:[#allocation8 + $0xd0] sm:$0xff]  ;;  %v126_v19 = vld [vmem:[#allocation8 + $0x48] sm:$0xff]  ;;  %v125_v21 = vld [vmem:[#allocation8 + $0x40] sm:$0xff] }
  0x19   :  { %152 = vmatpush.msra.mxu0 %v130_v8  ;;  %v142_v20 = vld [vmem:[#allocation8 + $0xc8] sm:$0xff]  ;;  %v141_v22 = vld [vmem:[#allocation8 + $0xc0] sm:$0xff]  ;;  %v124_v23 = vld [vmem:[#allocation8 + $0x38] sm:$0xff] }
  0x1a   :  { %175 = vmatpush.msra.mxu1 %v146_v9  ;;  %v140_v24 = vld [vmem:[#allocation8 + $0xb8] sm:$0xff]  ;;  %v123_v25 = vld [vmem:[#allocation8 + $0x30] sm:$0xff]  ;;  %v122_v27 = vld [vmem:[#allocation8 + $0x28] sm:$0xff] }
  0x1b   :  { %153 = vmatpush.msra.mxu0 %v129_v11  ;;  %v139_v26 = vld [vmem:[#allocation8 + $0xb0] sm:$0xff]  ;;  %v138_v28 = vld [vmem:[#allocation8 + $0xa8] sm:$0xff]  ;;  %v121_v29 = vld [vmem:[#allocation8 + $0x20] sm:$0xff] }
  0x1c   :  { %176 = vmatpush.msra.mxu1 %v145_v12  ;;  %v137_v30 = vld [vmem:[#allocation8 + $0xa0] sm:$0xff]  ;;  %v120_v31 = vld [vmem:[#allocation8 + $0x18] sm:$0xff]  ;;  %v119_v33 = vld [vmem:[#allocation8 + $0x10] sm:$0xff] }
  0x1d   :  { %154 = vmatpush.msra.mxu0 %v128_v14  ;;  %v136_v32 = vld [vmem:[#allocation8 + $0x98] sm:$0xff]  ;;  %v135_v34 = vld [vmem:[#allocation8 + $0x90] sm:$0xff]  ;;  %v118_v35 = vld [vmem:[#allocation8 + $0x8] sm:$0xff] }
  0x1e   :  { %177 = vmatpush.msra.mxu1 %v144_v15  ;;  %v134_v36 = vld [vmem:[#allocation8 + $0x88] sm:$0xff]  ;;  %v117_v37 = vld [vmem:[#allocation8] sm:$0xff]  ;;  %v92_v39 = vld [vmem:[#allocation7] ss:$8 sm:$0x3] }
  0x1f   :  { %155 = vmatpush.msra.mxu0 %v127_v16  ;;  %90 = vadd.xlane.f32.xlu0 %v89_v18  ;;  %v133_v38 = vld [vmem:[#allocation8 + $0x80] sm:$0xff]  ;;  %v94_v40 = vld [vmem:[#allocation7 + $0x1] ss:$8 sm:$0x3]  ;;  %v96_v41 = vperm.slane %v92_v39, 0  ;;  %v97_v42 = vperm.slane %v92_v39, 1 }
  0x20   :  { %178 = vmatpush.msra.mxu1 %v143_v17  ;;  %v105_v43 = vperm.slane %v94_v40, 0  ;;  %v106_v44 = vperm.slane %v94_v40, 1  ;;  %v242_v59 = vld [vmem:[#allocation8 + $0x178] sm:$0xff]  ;;  %v241_v60 = vld [vmem:[#allocation8 + $0x170] sm:$0xff]  ;;  %v240_v61 = vld [vmem:[#allocation8 + $0x168] sm:$0xff] }
  0x21   :  { %156 = vmatpush.msra.mxu0 %v126_v19  ;;  %244 = vmatpush.msra.mxu3 %v242_v59  ;;  %v239_v62 = vld [vmem:[#allocation8 + $0x160] sm:$0xff]  ;;  %v238_v63 = vld [vmem:[#allocation8 + $0x158] sm:$0xff]  ;;  %v237_v1 = vld [vmem:[#allocation8 + $0x150] sm:$0xff] }
  0x22   :  { %179 = vmatpush.msra.mxu1 %v142_v20  ;;  %v236_v4 = vld [vmem:[#allocation8 + $0x148] sm:$0xff]  ;;  %v235_v5 = vld [vmem:[#allocation8 + $0x140] sm:$0xff]  ;;  %v234_v6 = vld [vmem:[#allocation8 + $0x138] sm:$0xff] }
  0x23   :  { %157 = vmatpush.msra.mxu0 %v125_v21  ;;  %245 = vmatpush.msra.mxu3 %v241_v60  ;;  %v233_v8 = vld [vmem:[#allocation8 + $0x130] sm:$0xff]  ;;  %v232_v11 = vld [vmem:[#allocation8 + $0x128] sm:$0xff]  ;;  %v231_v13 = vld [vmem:[#allocation8 + $0x120] sm:$0xff] }
  0x24   :  { %180 = vmatpush.msra.mxu1 %v141_v22  ;;  %v230_v15 = vld [vmem:[#allocation8 + $0x118] sm:$0xff]  ;;  %v229_v16 = vld [vmem:[#allocation8 + $0x110] sm:$0xff]  ;;  %v228_v17 = vld [vmem:[#allocation8 + $0x108] sm:$0xff] }
  0x25   :  { %158 = vmatpush.msra.mxu0 %v124_v23  ;;  %246 = vmatpush.msra.mxu3 %v240_v61  ;;  %v227_v18 = vld [vmem:[#allocation8 + $0x100] sm:$0xff]  ;;  %v149_v19 = vld [vmem:[#allocation7 + $0x2] ss:$0 sm:$0xff] }
  0x26   :  { %181 = vmatpush.msra.mxu1 %v140_v24 }
  0x27   :  { %159 = vmatpush.msra.mxu0 %v123_v25  ;;  %247 = vmatpush.msra.mxu3 %v239_v62 }
  0x28   :  { %182 = vmatpush.msra.mxu1 %v139_v26 }
  0x29   :  { %160 = vmatpush.msra.mxu0 %v122_v27  ;;  %248 = vmatpush.msra.mxu3 %v238_v63 }
  0x2a   :  { %183 = vmatpush.msra.mxu1 %v138_v28  ;;  %v243_v28 = vld [vmem:[#allocation7 + $0xa] ss:$0 sm:$0xff] }
  0x2b   :  { %161 = vmatpush.msra.mxu0 %v121_v29  ;;  %249 = vmatpush.msra.mxu3 %v237_v1 }
  0x2c   :  { %184 = vmatpush.msra.mxu1 %v137_v30 }
  0x2d   :  { %162 = vmatpush.msra.mxu0 %v120_v31  ;;  %250 = vmatpush.msra.mxu3 %v236_v4 }
  0x2e   :  { %185 = vmatpush.msra.mxu1 %v136_v32 }
  0x2f   :  { %163 = vmatpush.msra.mxu0 %v119_v33  ;;  %251 = vmatpush.msra.mxu3 %v235_v5 }
  0x30   :  { %186 = vmatpush.msra.mxu1 %v135_v34 }
  0x31   :  { %164 = vmatpush.msra.mxu0 %v118_v35  ;;  %252 = vmatpush.msra.mxu3 %v234_v6 }
  0x32   :  { %187 = vmatpush.msra.mxu1 %v134_v36 }
  0x33   :  { %165 = vmatpush.msra.mxu0 %v117_v37  ;;  %253 = vmatpush.msra.mxu3 %v233_v8 }
  0x34   :  { %188 = vmatpush.msra.mxu1 %v133_v38 }
  0x35   :  { %254 = vmatpush.msra.mxu3 %v232_v11 }
  0x37   :  { %255 = vmatpush.msra.mxu3 %v231_v13 }
  0x39   :  { %256 = vmatpush.msra.mxu3 %v230_v15 }
  0x3b   :  { %257 = vmatpush.msra.mxu3 %v229_v16 }
  0x3d   :  { %258 = vmatpush.msra.mxu3 %v228_v17 }
  0x3f   :  { %259 = vmatpush.msra.mxu3 %v227_v18 }
  0x8a   :  { %v88_v45 = vpop.xlane.xlu0 %87 }
  0x8b   :  { %v100_v46 = vmul.f32 %v96_v41, %v88_v45  ;;  %v101_v47 = vmul.f32 %v97_v42, %v88_v45 }
  0x8d   :  { %v109_v48 = vadd.f32 %v105_v43, %v100_v46  ;;  %v110_v49 = vadd.f32 %v106_v44, %v101_v47 }
  0x8f   :  { %v113_v50 = vmax.f32 %v109_v48, 0.0  ;;  %v114_v51 = vmax.f32 %v110_v49, 0.0 }
  0x91   :  { %166 = vmatmul.f32.vlgmr.msra.gmra.mxu0 %v113_v50  ;;  %189 = vmatmul.f32.vlgmr.msra.gmra.mxu1 %v114_v51 }
  0x92   :  { %v91_v52 = vpop.xlane.xlu0 %90 }
  0x93   :  { %v102_v53 = vmul.f32 %v96_v41, %v91_v52  ;;  %v103_v54 = vmul.f32 %v97_v42, %v91_v52 }
  0x95   :  { %v111_v55 = vadd.f32 %v105_v43, %v102_v53  ;;  %v112_v56 = vadd.f32 %v106_v44, %v103_v54 }
  0x97   :  { %v115_v57 = vmax.f32 %v111_v55, 0.0  ;;  %v116_v58 = vmax.f32 %v112_v56, 0.0 }
  0x99   :  { %169 = vmatmul.f32.gmra.mxu0 %v115_v57  ;;  %192 = vmatmul.f32.gmra.mxu1 %v116_v58 }
 0x10e   :  { %v167_v2 = vpop.f32.mrf.mxu0  ;;  %v190_v3 = vpop.f32.mrf.mxu1 }
 0x10f   :  { %v191_v14 = vadd.f32 %v190_v3, %v167_v2 }
 0x116   :  { %v170_v9 = vpop.f32.mrf.mxu0  ;;  %v193_v10 = vpop.f32.mrf.mxu1 }
 0x117   :  { %v194_v12 = vadd.f32 %v193_v10, %v170_v9 }
 0x119   :  { %216 = vmatpush.msra.mxu2 %v194_v12 }
 0x11b   :  { %217 = vmatpush.msra.mxu2 %v191_v14 }
 0x11c   :  { %315 = vmatmul.msk.f32.vlgmr.msra.gmra.mxu2 %vm85_vm0, %v505_v0 }
 0x124   :  { %316 = vmatmul.msk.f32.gmra.mxu2 %vm85_vm0, %v508_v7 }
 0x19f   :  { %v219_v20 = vpop.f32.mrf.mxu2 }
 0x1a0   :  { %v220_v21 = vadd.f32 %v219_v20, %v149_v19 }
 0x1a2   :  { %v225_v22 = vmax.f32 %v220_v21, 0.0 }
 0x1a4   :  { %260 = vmatmul.f32.vlgmr.msra.gmra.mxu3 %v225_v22 }
 0x1a7   :  { %v222_v23 = vpop.f32.mrf.mxu2 }
 0x1a8   :  { %v223_v24 = vadd.f32 %v222_v23, %v149_v19 }
 0x1aa   :  { %v226_v25 = vmax.f32 %v223_v24, 0.0 }
 0x1ac   :  { %263 = vmatmul.f32.gmra.mxu3 %v226_v25 }
 0x227   :  { %v261_v26 = vpop.f32.mrf.mxu3 }
 0x22f   :  { %v264_v27 = vpop.f32.mrf.mxu3 }
 0x230   :  { %281 = vmatpush.msrb.mxu2 %v264_v27 }
 0x232   :  { %282 = vmatpush.msrb.mxu2 %v261_v26 }
 0x233   :  { %317 = vmatmul.msk.f32.vlgmr.msrb.gmra.mxu2 %vm85_vm0, %v505_v0 }
 0x23b   :  { %318 = vmatmul.msk.f32.gmra.mxu2 %vm85_vm0, %v508_v7 }
 0x2b6   :  { %v284_v29 = vpop.f32.mrf.mxu2 }
 0x2b7   :  { %v285_v30 = vadd.f32 %v284_v29, %v243_v28 }
 0x2b9   :  { %v290_v31 = vmax.f32 %v285_v30, 0.0 }
 0x2bb   :  { %292 = vst [vmem:[#allocation10] sm:$0xff] %v290_v31 }
 0x2be   :  { %v287_v32 = vpop.f32.mrf.mxu2 }
 0x2bf   :  { %v288_v33 = vadd.f32 %v287_v32, %v243_v28 }
 0x2c1   :  { %v291_v34 = vmax.f32 %v288_v33, 0.0 }
 0x2c3   :  { %293 = vst [vmem:[#allocation10 + $0x8] sm:$0xff] %v291_v34 }
 0x2c4   :  { %306 = dma.vmem_to_hbm [thread:$0]  %s299_s3, 256, %s301_s11, [#allocation4], %s457_s25, %s457_s25, %s458_s26  }
 0x2c5   :  { %453 = dma.done.wait [#allocation4], 256  }
 0x2c6   :  { %454 = vsyncadd [#allocation4], 4294967040 }
 0x2c7   :  { %311 = vsyncpa [#allocation3], 1 }
 0x2c8   :  { %312 = vsyncpa [#allocation6], 1 }
 0x2c9   :  { %313 = vsyncpa [#allocation9], 1 }
 0x2ca   :  { %314 = vsyncpa [#allocation4], 1 }

</bundles_post_ra>
